<compile_context>
chip_gen: v7x
topology: tpu7x:2x2x1
jax: 0.10.0
libtpu: 0.0.40
codegen_flags: <defaults>
</compile_context>

<pallas_src>
from functools import partial

import jax
import jax.numpy as jnp
from jax import lax
from jax.experimental import pallas as pl
from jax.experimental.pallas import tpu as pltpu


def _ntxent_kernel(z1_ref, z2_ref, o_ref, s11_acc, s22_acc, s12_acc, *, temperature):
    k = pl.program_id(0)
    nk = pl.num_programs(0)

    @pl.when(k == 0)
    def _init():
        s11_acc[...] = jnp.zeros_like(s11_acc)
        s22_acc[...] = jnp.zeros_like(s22_acc)
        s12_acc[...] = jnp.zeros_like(s12_acc)

    z1 = z1_ref[...]                         # (B, tk) in the input dtype
    z2 = z2_ref[...]                         # (B, tk)
    # A . B^T expressed as a last-dim contraction: no materialized transpose.
    dn = (((1,), (1,)), ((), ()))
    s11_acc[...] += lax.dot_general(z1, z1, dn, preferred_element_type=jnp.float32)
    s22_acc[...] += lax.dot_general(z2, z2, dn, preferred_element_type=jnp.float32)
    s12_acc[...] += lax.dot_general(z1, z2, dn, preferred_element_type=jnp.float32)

    @pl.when(k == nk - 1)
    def _epilogue():
        s11 = s11_acc[...]
        s22 = s22_acc[...]
        s12 = s12_acc[...]
        if temperature != 1.0:   # static Python constant; default temp skips 3 BxB passes
            inv_t = jnp.float32(1.0 / temperature)
            s11 = s11 * inv_t
            s22 = s22 * inv_t
            s12 = s12 * inv_t

        b = s12.shape[0]
        row = lax.broadcasted_iota(jnp.int32, (b, b), 0)
        col = lax.broadcasted_iota(jnp.int32, (b, b), 1)
        diag = row == col
        neg_inf = jnp.float32(-jnp.inf)
        s11m = jnp.where(diag, neg_inf, s11)
        s22m = jnp.where(diag, neg_inf, s22)

        # rows 0..B-1 : logits = [s12 | s11m], target col i -> s12[i, i]
        m1 = jnp.maximum(jnp.max(s12, axis=1, keepdims=True),
                         jnp.max(s11m, axis=1, keepdims=True))           # (B, 1)
        den1 = (jnp.sum(jnp.exp(s12 - m1), axis=1, keepdims=True)
                + jnp.sum(jnp.exp(s11m - m1), axis=1, keepdims=True))    # (B, 1)
        lse1 = m1 + jnp.log(den1)

        # rows B..2B-1 : logits = [s22m | s12^T], target col B+i -> s12[i, i]
        # s22m is symmetric (row stats == column stats), so everything can be
        # reduced along axis 0 -- s12^T is never materialized.
        m2 = jnp.maximum(jnp.max(s22m, axis=0, keepdims=True),
                         jnp.max(s12, axis=0, keepdims=True))            # (1, B)
        den2 = (jnp.sum(jnp.exp(s22m - m2), axis=0, keepdims=True)
                + jnp.sum(jnp.exp(s12 - m2), axis=0, keepdims=True))     # (1, B)
        lse2 = m2 + jnp.log(den2)

        diag_sum = jnp.sum(jnp.where(diag, s12, 0.0))                    # sum_i s12[i, i]
        loss = (jnp.sum(lse1) + jnp.sum(lse2) - 2.0 * diag_sum) / jnp.float32(2 * b)
        o_ref[0, 0] = loss


def _pick_tk(d, max_tk=512):
    """Contraction tile: <= max_tk, 128-aligned (256 preferred) when tiling."""
    if d <= max_tk:
        return d                       # single step; block == full dim is always legal
    for cand in (512, 256, 128):       # prefer 256-multiples for v6e/v7x MXU cadence
        if d % cand == 0:
            return cand
    return 512                         # will zero-pad D up to a multiple of 512


def ntxent_loss(h1, h2, temperature=1.0, compute_dtype=None, max_tk=512):
    """h1, h2: (B, L, H). Returns scalar NT-Xent loss (dot similarity).

    compute_dtype: optional dtype for the MXU operands (e.g. jnp.bfloat16);
    accumulation and the LSE/CE epilogue are always float32.
    """
    b = h1.shape[0]
    z1 = h1.reshape(b, -1)
    z2 = h2.reshape(b, -1)
    if compute_dtype is not None:
        z1 = z1.astype(compute_dtype)
        z2 = z2.astype(compute_dtype)
    d = z1.shape[1]

    tk = _pick_tk(d, max_tk)
    num_k = pl.cdiv(d, tk)
    d_pad = num_k * tk
    if d_pad != d:
        # zero padding of the contraction dim is exact for dot products
        pad = ((0, 0), (0, d_pad - d))
        z1 = jnp.pad(z1, pad)
        z2 = jnp.pad(z2, pad)

    itemsize = jnp.dtype(z1.dtype).itemsize
    cost = pl.CostEstimate(
        flops=6 * b * b * d_pad,                      # 3 gram matmuls
        transcendentals=4 * b * b + 2 * b,            # exp + log in the epilogue
        bytes_accessed=2 * b * d_pad * itemsize + 4,
    )

    out = pl.pallas_call(
        partial(_ntxent_kernel, temperature=float(temperature)),
        out_shape=jax.ShapeDtypeStruct((1, 1), jnp.float32),
        grid_spec=pltpu.PrefetchScalarGridSpec(
            num_scalar_prefetch=0,
            grid=(num_k,),
            in_specs=[
                pl.BlockSpec((b, tk), lambda k: (0, k)),
                pl.BlockSpec((b, tk), lambda k: (0, k)),
            ],
            out_specs=pl.BlockSpec((1, 1), lambda k: (0, 0),
                                   memory_space=pltpu.MemorySpace.SMEM),
            scratch_shapes=[
                pltpu.VMEM((b, b), jnp.float32),   # s11 accumulator
                pltpu.VMEM((b, b), jnp.float32),   # s22 accumulator
                pltpu.VMEM((b, b), jnp.float32),   # s12 accumulator
            ],
        ),
        compiler_params=pltpu.CompilerParams(
            dimension_semantics=("arbitrary",),    # K is a reduction axis
        ),
        cost_estimate=cost,
    )(z1, z2)
    return out[0, 0]


def _reference_loss(h1, h2, temperature=1.0, compute_dtype=None):
    """Plain-JAX reference mirroring the PyTorch forward (calcsim='dot')."""
    b = h1.shape[0]
    z1 = h1.reshape(b, -1)
    z2 = h2.reshape(b, -1)
    if compute_dtype is not None:
        z1 = z1.astype(compute_dtype)
        z2 = z2.astype(compute_dtype)

    def sim(a, c):
        return jnp.einsum("id,jd->ij", a, c,
                          preferred_element_type=jnp.float32) / temperature

    s11 = sim(z1, z1)
    s22 = sim(z2, z2)
    s12 = sim(z1, z2)
    eye = jnp.eye(b, dtype=bool)
    s11 = jnp.where(eye, -jnp.inf, s11)
    s22 = jnp.where(eye, -jnp.inf, s22)
    raw1 = jnp.concatenate([s12, s11], axis=-1)
    raw2 = jnp.concatenate([s22, s12.T], axis=-1)
    raw = jnp.concatenate([raw1, raw2], axis=0)        # (2B, 2B)
    targets = jnp.arange(2 * b)
    lse = jax.nn.logsumexp(raw, axis=-1)
    picked = raw[jnp.arange(2 * b), targets]
    return jnp.mean(lse - picked)


if __name__ == "__main__":
    key = jax.random.PRNGKey(0)
    k1, k2, k3, k4 = jax.random.split(key, 4)

    # 1) module-consistent small shapes: batch=8, bert_max_len=8, hidden=32 (D=256)
    B, L, H = 8, 8, 32
    h1 = jax.random.normal(k1, (B, L, H), dtype=jnp.float32)
    h2 = jax.random.normal(k2, (B, L, H), dtype=jnp.float32)

    loss = ntxent_loss(h1, h2, temperature=1.0)
    jax.block_until_ready(loss)
    ref = _reference_loss(h1, h2, temperature=1.0)
    assert jnp.allclose(loss, ref, rtol=1e-4, atol=1e-4), (loss, ref)

    # 2) multi-step contraction path: D=600 -> zero-padded to 1024, 2 K tiles,
    #    non-default temperature exercises the scaling branch.
    B2, L2, H2 = 8, 8, 75
    g1 = jax.random.normal(k3, (B2, L2, H2), dtype=jnp.float32)
    g2 = jax.random.normal(k4, (B2, L2, H2), dtype=jnp.float32)
    loss2 = ntxent_loss(g1, g2, temperature=0.5)
    jax.block_until_ready(loss2)
    ref2 = _reference_loss(g1, g2, temperature=0.5)
    assert jnp.allclose(loss2, ref2, rtol=1e-3, atol=1e-3), (loss2, ref2)

    print("KERNEL_OK")
</pallas_src>

<mosaic_0001>
module attributes {stable_mosaic.version = 11 : i64} {
  func.func @_ntxent_kernel(%arg0: i32, %arg1: memref<8x256xf32, #tpu.memory_space<vmem>>, %arg2: memref<8x256xf32, #tpu.memory_space<vmem>>, %arg3: memref<1x1xf32, #tpu.memory_space<smem>>, %arg4: memref<8x8xf32, #tpu.memory_space<vmem>>, %arg5: memref<8x8xf32, #tpu.memory_space<vmem>>, %arg6: memref<8x8xf32, #tpu.memory_space<vmem>>) attributes {dimension_semantics = [#tpu.dimension_semantics<arbitrary>], iteration_bounds = array<i64: 1>, scalar_prefetch = 0 : i64, scratch_operands = 3 : i64, tpu.core_type = #tpu.core_type<tc>, window_params = [{transform_indices = @transform_0, window_bounds = array<i64: 8, 256>}, {transform_indices = @transform_1, window_bounds = array<i64: 8, 256>}, {transform_indices = @transform_2, window_bounds = array<i64: 1, 1>}]} {
    %c0_i32 = arith.constant 0 : i32
    %0 = arith.cmpi eq, %arg0, %c0_i32 : i32
    %1 = arith.extui %0 : i1 to i32
    %c0_i32_0 = arith.constant 0 : i32
    %2 = arith.cmpi ne, %1, %c0_i32_0 : i32
    scf.if %2 {
      %cst_20 = arith.constant 0.000000e+00 : f32
      %20 = vector.broadcast %cst_20 : f32 to vector<8x8xf32>
      %c0_21 = arith.constant 0 : index
      %c0_22 = arith.constant 0 : index
      %21 = vector.load %arg4[%c0_21, %c0_22] : memref<8x8xf32, #tpu.memory_space<vmem>>, vector<8x8xf32>
      tpu.vector_store %arg4[%c0_21, %c0_22], %20 {strides = array<i32>} : memref<8x8xf32, #tpu.memory_space<vmem>>, vector<8x8xf32>,
      %cst_23 = arith.constant 0.000000e+00 : f32
      %22 = vector.broadcast %cst_23 : f32 to vector<8x8xf32>
      %c0_24 = arith.constant 0 : index
      %c0_25 = arith.constant 0 : index
      %23 = vector.load %arg5[%c0_24, %c0_25] : memref<8x8xf32, #tpu.memory_space<vmem>>, vector<8x8xf32>
      tpu.vector_store %arg5[%c0_24, %c0_25], %22 {strides = array<i32>} : memref<8x8xf32, #tpu.memory_space<vmem>>, vector<8x8xf32>,
      %cst_26 = arith.constant 0.000000e+00 : f32
      %24 = vector.broadcast %cst_26 : f32 to vector<8x8xf32>
      %c0_27 = arith.constant 0 : index
      %c0_28 = arith.constant 0 : index
      %25 = vector.load %arg6[%c0_27, %c0_28] : memref<8x8xf32, #tpu.memory_space<vmem>>, vector<8x8xf32>
      tpu.vector_store %arg6[%c0_27, %c0_28], %24 {strides = array<i32>} : memref<8x8xf32, #tpu.memory_space<vmem>>, vector<8x8xf32>,
    } else {
    }
    %c0 = arith.constant 0 : index
    %c0_1 = arith.constant 0 : index
    %3 = vector.load %arg1[%c0, %c0_1] : memref<8x256xf32, #tpu.memory_space<vmem>>, vector<8x256xf32>
    %c0_2 = arith.constant 0 : index
    %c0_3 = arith.constant 0 : index
    %4 = vector.load %arg2[%c0_2, %c0_3] : memref<8x256xf32, #tpu.memory_space<vmem>>, vector<8x256xf32>
    %c0_4 = arith.constant 0 : index
    %c0_5 = arith.constant 0 : index
    %5 = vector.load %arg4[%c0_4, %c0_5] : memref<8x8xf32, #tpu.memory_space<vmem>>, vector<8x8xf32>
    %cst = arith.constant dense<0.000000e+00> : vector<8x8xf32>
    %6 = tpu.matmul %3, %3, %cst {dimension_numbers = #tpu.dot_dimension_numbers<[1], [1], [0], [0], [0, 0, 1, 0], [], []>} : vector<8x256xf32>, vector<8x256xf32>, vector<8x8xf32> -> vector<8x8xf32>
    %7 = arith.addf %5, %6 : vector<8x8xf32>
    %c0_6 = arith.constant 0 : index
    %c0_7 = arith.constant 0 : index
    %8 = vector.load %arg4[%c0_6, %c0_7] : memref<8x8xf32, #tpu.memory_space<vmem>>, vector<8x8xf32>
    tpu.vector_store %arg4[%c0_6, %c0_7], %7 {strides = array<i32>} : memref<8x8xf32, #tpu.memory_space<vmem>>, vector<8x8xf32>,
    %c0_8 = arith.constant 0 : index
    %c0_9 = arith.constant 0 : index
    %9 = vector.load %arg5[%c0_8, %c0_9] : memref<8x8xf32, #tpu.memory_space<vmem>>, vector<8x8xf32>
    %cst_10 = arith.constant dense<0.000000e+00> : vector<8x8xf32>
    %10 = tpu.matmul %4, %4, %cst_10 {dimension_numbers = #tpu.dot_dimension_numbers<[1], [1], [0], [0], [0, 0, 1, 0], [], []>} : vector<8x256xf32>, vector<8x256xf32>, vector<8x8xf32> -> vector<8x8xf32>
    %11 = arith.addf %9, %10 : vector<8x8xf32>
    %c0_11 = arith.constant 0 : index
    %c0_12 = arith.constant 0 : index
    %12 = vector.load %arg5[%c0_11, %c0_12] : memref<8x8xf32, #tpu.memory_space<vmem>>, vector<8x8xf32>
    tpu.vector_store %arg5[%c0_11, %c0_12], %11 {strides = array<i32>} : memref<8x8xf32, #tpu.memory_space<vmem>>, vector<8x8xf32>,
    %c0_13 = arith.constant 0 : index
    %c0_14 = arith.constant 0 : index
    %13 = vector.load %arg6[%c0_13, %c0_14] : memref<8x8xf32, #tpu.memory_space<vmem>>, vector<8x8xf32>
    %cst_15 = arith.constant dense<0.000000e+00> : vector<8x8xf32>
    %14 = tpu.matmul %3, %4, %cst_15 {dimension_numbers = #tpu.dot_dimension_numbers<[1], [1], [0], [0], [0, 0, 1, 0], [], []>} : vector<8x256xf32>, vector<8x256xf32>, vector<8x8xf32> -> vector<8x8xf32>
    %15 = arith.addf %13, %14 : vector<8x8xf32>
    %c0_16 = arith.constant 0 : index
    %c0_17 = arith.constant 0 : index
    %16 = vector.load %arg6[%c0_16, %c0_17] : memref<8x8xf32, #tpu.memory_space<vmem>>, vector<8x8xf32>
    tpu.vector_store %arg6[%c0_16, %c0_17], %15 {strides = array<i32>} : memref<8x8xf32, #tpu.memory_space<vmem>>, vector<8x8xf32>,
    %c0_i32_18 = arith.constant 0 : i32
    %17 = arith.cmpi eq, %arg0, %c0_i32_18 : i32
    %18 = arith.extui %17 : i1 to i32
    %c0_i32_19 = arith.constant 0 : i32
    %19 = arith.cmpi ne, %18, %c0_i32_19 : i32
    scf.if %19 {
      %c0_20 = arith.constant 0 : index
      %c0_21 = arith.constant 0 : index
      %20 = vector.load %arg4[%c0_20, %c0_21] : memref<8x8xf32, #tpu.memory_space<vmem>>, vector<8x8xf32>
      %c0_22 = arith.constant 0 : index
      %c0_23 = arith.constant 0 : index
      %21 = vector.load %arg5[%c0_22, %c0_23] : memref<8x8xf32, #tpu.memory_space<vmem>>, vector<8x8xf32>
      %c0_24 = arith.constant 0 : index
      %c0_25 = arith.constant 0 : index
      %22 = vector.load %arg6[%c0_24, %c0_25] : memref<8x8xf32, #tpu.memory_space<vmem>>, vector<8x8xf32>
      %23 = tpu.iota {dimensions = array<i32: 0>} : vector<8x8xi32>
      %24 = tpu.iota {dimensions = array<i32: 1>} : vector<8x8xi32>
      %25 = arith.cmpi eq, %23, %24 : vector<8x8xi32>
      %cst_26 = arith.constant 0xFF800000 : f32
      %26 = vector.broadcast %cst_26 : f32 to vector<8x8xf32>
      %27 = arith.select %25, %26, %20 : vector<8x8xi1>, vector<8x8xf32>
      %cst_27 = arith.constant 0xFF800000 : f32
      %28 = vector.broadcast %cst_27 : f32 to vector<8x8xf32>
      %29 = arith.select %25, %28, %21 : vector<8x8xi1>, vector<8x8xf32>
      %cst_28 = arith.constant dense<0xFF800000> : vector<8xf32>
      %30 = vector.multi_reduction <maximumf>, %22, %cst_28 [1] : vector<8x8xf32> to vector<8xf32>
      %31 = vector.shape_cast %30 : vector<8xf32> to vector<8x1xf32>
      %cst_29 = arith.constant dense<0xFF800000> : vector<8xf32>
      %32 = vector.multi_reduction <maximumf>, %27, %cst_29 [1] : vector<8x8xf32> to vector<8xf32>
      %33 = vector.shape_cast %32 : vector<8xf32> to vector<8x1xf32>
      %34 = arith.maximumf %31, %33 : vector<8x1xf32>
      %35 = vector.broadcast %34 : vector<8x1xf32> to vector<8x8xf32>
      %36 = arith.subf %22, %35 : vector<8x8xf32>
      %37 = math.exp %36 : vector<8x8xf32>
      %cst_30 = arith.constant dense<0.000000e+00> : vector<8xf32>
      %38 = vector.multi_reduction <add>, %37, %cst_30 [1] : vector<8x8xf32> to vector<8xf32>
      %39 = vector.shape_cast %38 : vector<8xf32> to vector<8x1xf32>
      %40 = vector.broadcast %34 : vector<8x1xf32> to vector<8x8xf32>
      %41 = arith.subf %27, %40 : vector<8x8xf32>
      %42 = math.exp %41 : vector<8x8xf32>
      %cst_31 = arith.constant dense<0.000000e+00> : vector<8xf32>
      %43 = vector.multi_reduction <add>, %42, %cst_31 [1] : vector<8x8xf32> to vector<8xf32>
      %44 = vector.shape_cast %43 : vector<8xf32> to vector<8x1xf32>
      %45 = arith.addf %39, %44 : vector<8x1xf32>
      %46 = math.log %45 : vector<8x1xf32>
      %47 = arith.addf %34, %46 : vector<8x1xf32>
      %cst_32 = arith.constant dense<0xFF800000> : vector<8xf32>
      %48 = vector.multi_reduction <maximumf>, %29, %cst_32 [0] : vector<8x8xf32> to vector<8xf32>
      %49 = vector.shape_cast %48 : vector<8xf32> to vector<1x8xf32>
      %cst_33 = arith.constant dense<0xFF800000> : vector<8xf32>
      %50 = vector.multi_reduction <maximumf>, %22, %cst_33 [0] : vector<8x8xf32> to vector<8xf32>
      %51 = vector.shape_cast %50 : vector<8xf32> to vector<1x8xf32>
      %52 = arith.maximumf %49, %51 : vector<1x8xf32>
      %53 = vector.broadcast %52 : vector<1x8xf32> to vector<8x8xf32>
      %54 = arith.subf %29, %53 : vector<8x8xf32>
      %55 = math.exp %54 : vector<8x8xf32>
      %cst_34 = arith.constant dense<0.000000e+00> : vector<8xf32>
      %56 = vector.multi_reduction <add>, %55, %cst_34 [0] : vector<8x8xf32> to vector<8xf32>
      %57 = vector.shape_cast %56 : vector<8xf32> to vector<1x8xf32>
      %58 = vector.broadcast %52 : vector<1x8xf32> to vector<8x8xf32>
      %59 = arith.subf %22, %58 : vector<8x8xf32>
      %60 = math.exp %59 : vector<8x8xf32>
      %cst_35 = arith.constant dense<0.000000e+00> : vector<8xf32>
      %61 = vector.multi_reduction <add>, %60, %cst_35 [0] : vector<8x8xf32> to vector<8xf32>
      %62 = vector.shape_cast %61 : vector<8xf32> to vector<1x8xf32>
      %63 = arith.addf %57, %62 : vector<1x8xf32>
      %64 = math.log %63 : vector<1x8xf32>
      %65 = arith.addf %52, %64 : vector<1x8xf32>
      %cst_36 = arith.constant 0.000000e+00 : f32
      %66 = vector.broadcast %cst_36 : f32 to vector<8x8xf32>
      %67 = arith.select %25, %22, %66 : vector<8x8xi1>, vector<8x8xf32>
      %68 = vector.shape_cast %67 : vector<8x8xf32> to vector<1x8x8xf32>
      %cst_37 = arith.constant dense<0.000000e+00> : vector<1xf32>
      %69 = vector.multi_reduction <add>, %68, %cst_37 [1, 2] : vector<1x8x8xf32> to vector<1xf32>
      %70 = vector.shape_cast %69 : vector<1xf32> to vector<1x1x1xf32>
      %71 = vector.extract %70[0, 0, 0] : f32 from vector<1x1x1xf32>
      %72 = vector.shape_cast %47 : vector<8x1xf32> to vector<1x8x1xf32>
      %cst_38 = arith.constant dense<0.000000e+00> : vector<1xf32>
      %73 = vector.multi_reduction <add>, %72, %cst_38 [1, 2] : vector<1x8x1xf32> to vector<1xf32>
      %74 = vector.shape_cast %73 : vector<1xf32> to vector<1x1x1xf32>
      %75 = vector.extract %74[0, 0, 0] : f32 from vector<1x1x1xf32>
      %76 = vector.shape_cast %65 : vector<1x8xf32> to vector<1x1x8xf32>
      %cst_39 = arith.constant dense<0.000000e+00> : vector<1xf32>
      %77 = vector.multi_reduction <add>, %76, %cst_39 [1, 2] : vector<1x1x8xf32> to vector<1xf32>
      %78 = vector.shape_cast %77 : vector<1xf32> to vector<1x1x1xf32>
      %79 = vector.extract %78[0, 0, 0] : f32 from vector<1x1x1xf32>
      %80 = arith.addf %75, %79 : f32
      %cst_40 = arith.constant 2.000000e+00 : f32
      %81 = arith.mulf %cst_40, %71 : f32
      %82 = arith.subf %80, %81 : f32
      %cst_41 = arith.constant 1.600000e+01 : f32
      %83 = arith.divf %82, %cst_41 : f32
      %c0_42 = arith.constant 0 : index
      %c0_43 = arith.constant 0 : index
      %84 = memref.load %arg3[%c0_42, %c0_43] : memref<1x1xf32, #tpu.memory_space<smem>>
      memref.store %83, %arg3[%c0_42, %c0_43] : memref<1x1xf32, #tpu.memory_space<smem>>
    } else {
    }
    return
  }
  func.func @transform_0(%arg0: i32) -> (i32, i32) {
    %c0_i32 = arith.constant 0 : i32
    %c0_i32_0 = arith.constant 0 : i32
    return %c0_i32, %arg0 : i32, i32
  }
  func.func @transform_1(%arg0: i32) -> (i32, i32) {
    %c0_i32 = arith.constant 0 : i32
    %c0_i32_0 = arith.constant 0 : i32
    return %c0_i32, %arg0 : i32, i32
  }
  func.func @transform_2(%arg0: i32) -> (i32, i32) {
    %c0_i32 = arith.constant 0 : i32
    %c0_i32_0 = arith.constant 0 : i32
    %c0_i32_1 = arith.constant 0 : i32
    return %c0_i32, %c0_i32_0 : i32, i32
  }
}

</mosaic_0001>

<bundles_post_ra>
// kernel: tpu_custom_call.1
= control target key start
LH: loop header
LB: loop body
LE: loop exit
PB: predicated region body
PF: predicated region fallthrough
CT: control target
= control target key end

     0   :  { %7 = vsyncpa [#allocation6], 0  ;;  %s552_s0 = inlined_call_operand.hbm [shape: f32[8,256], index: 0, kind: input, shape index: {}]   ;;  %s553_s1 = inlined_call_operand.hbm [shape: f32[8,256], index: 1, kind: input, shape index: {}]   ;;  %s554_s2 = inlined_call_operand.hbm [shape: f32[1,1], index: 2, kind: output, shape index: {}]  }
   0x1   :  { %8 = vsyncpa [#allocation9], 0 }
   0x2   :  { %9 = vsyncpa [#allocation7], 0  ;;  %s480_s9 = smov [#allocation5]   ;;  %s481_s11 = smov [#allocation8]  }
   0x3   :  { %s16_s10 = sshll.u32 %s480_s9, 4  ;;  %s26_s12 = sshll.u32 %s481_s11, 4  ;;  %s17_s10 = int_to_ptr.vmem [resolvable:$true] %s16_s10  ;;  %s27_s12 = int_to_ptr.vmem [resolvable:$true] %s26_s12 }
   0x4   :  { %s420_s15 = scalar_lea.hbm %s552_s0, 256 }
   0x5   :  { %p421_p0 = scmp.ne.s32.totalorder %s552_s0, %s420_s15  ;;  %p424_p1 = scmp.lt.u32.totalorder %s420_s15, %s552_s0 }
   0x7   :  { %p426_p2 = pnand %p424_p1, %p421_p0 }
   0x9   :  { %429 = shalt.err (!%p426_p2)
}
   0xa   :  { %s430_s20 = scalar_lea.vmem %s17_s10, 256  ;;  %p435_p4 = scmp.lt.s32.totalorder %s17_s10, %s17_s10 }
   0xb   :  { %p431_p3 = scmp.ne.s32.totalorder %s17_s10, %s430_s20  ;;  %p436_p5 = scmp.lt.s32.totalorder %s430_s20, %s430_s20 }
   0xd   :  { %p437_p6 = por %p436_p5, %p435_p4 }
   0xf   :  { %p438_p7 = pnand %p437_p6, %p431_p3 }
  0x11   :  { %441 = shalt.err (!%p438_p7)
}
  0x12   :  { %19 = dma.hbm_to_vmem [thread:$0]  %s552_s0, 256, %s17_s10, [#allocation6]  }
  0x13   :  { %s442_s25 = scalar_lea.hbm %s553_s1, 256 }
  0x14   :  { %p443_p8 = scmp.ne.s32.totalorder %s553_s1, %s442_s25  ;;  %p446_p9 = scmp.lt.u32.totalorder %s442_s25, %s553_s1 }
  0x16   :  { %p448_p10 = pnand %p446_p9, %p443_p8 }
  0x18   :  { %451 = shalt.err (!%p448_p10)
}
  0x19   :  { %s452_s30 = scalar_lea.vmem %s27_s12, 256  ;;  %p457_p12 = scmp.lt.s32.totalorder %s27_s12, %s27_s12 }
  0x1a   :  { %p453_p11 = scmp.ne.s32.totalorder %s27_s12, %s452_s30  ;;  %p458_p13 = scmp.lt.s32.totalorder %s452_s30, %s452_s30 }
  0x1c   :  { %p459_p0 = por %p458_p13, %p457_p12 }
  0x1e   :  { %p460_p1 = pnand %p459_p0, %p453_p11 }
  0x20   :  { %463 = shalt.err (!%p460_p1)
}
  0x21   :  { %29 = dma.hbm_to_vmem [thread:$0]  %s553_s1, 256, %s27_s12, [#allocation9]  }
  0x22   :  { %474 = dma.done.wait [#allocation6], 256  }
  0x23   :  { %475 = vsyncadd [#allocation6], 4294967040 }
  0x24   :  { %476 = dma.done.wait [#allocation9], 256  }
  0x25   :  { %477 = vsyncadd [#allocation9], 4294967040  ;;  %vm40_vm0 = vcmask 64512   ;;  %v482_v0 = vmov 0.0   ;;  %v45_v1 = vld [vmem:[#allocation5 + $0x8] sm:$0xff]  ;;  %v44_v2 = vld [vmem:[#allocation5] sm:$0xff]  ;;  %v274_v14 = vlaneseq }
  0x26   :  { %41 = vst.msk [vmem:[#allocation2] sm:$0xff] %vm40_vm0, %v482_v0  ;;  %42 = vst.msk [vmem:[#allocation3] sm:$0xff] %vm40_vm0, %v482_v0  ;;  %v47_v3 = vld [vmem:[#allocation8 + $0x8] sm:$0xff]  ;;  %49 = vmatprep.subr.mxu0 %v45_v1  ;;  %113 = vmatprep.mubr.f32.mxu0 %v45_v1  ;;  %v46_v4 = vld [vmem:[#allocation8] sm:$0xff]  ;;  %vm364_vm2 = vcmask 57344   ;;  %vm353_vm3 = vcmask 7168  }
  0x27   :  { %43 = vst.msk [vmem:[#allocation4] sm:$0xff] %vm40_vm0, %v482_v0  ;;  %50 = vmatpush1.xpose.msra.mxu0 %v44_v2  ;;  %123 = vmatprep.subr.mxu1 %v47_v3  ;;  %v275_v18 = vshrl.u32 %v274_v14, 7  ;;  %v277_v19 = vand.u32 127, %v274_v14  ;;  %s464_s12 = scalar_lea.hbm %s554_s2, 16 }
  0x28   :  { %124 = vmatpush1.xpose.msra.mxu1 %v46_v4  ;;  %196 = vmatprep.subr.mxu0 %v47_v3  ;;  %p465_p2 = scmp.ne.s32.totalorder %s554_s2, %s464_s12  ;;  %p468_p3 = scmp.lt.u32.totalorder %s464_s12, %s554_s2 }
  0x29   :  { %187 = vmatprep.mubr.f32.mxu1 %v47_v3  ;;  %vm278_vm1 = vcmp.eq.s32.totalorder %v275_v18, %v277_v19 }
  0x2a   :  { %114 = vmatmul.mubr.f32.vlgmr.msra.gmra.mrb[0].mxu0 %v44_v2  ;;  %p470_p4 = pnand %p468_p3, %p465_p2 }
  0x2b   :  { %197 = vmatpush1.xpose.msra.mxu0 %v46_v4  ;;  %188 = vmatmul.mubr.f32.vlgmr.msra.gmra.mrb[0].mxu1 %v46_v4 }
  0x2c   :  { %260 = vmatprep.mubr.f32.mxu0 %v45_v1 }
  0x2d   :  { %v48_v5 = vld [vmem:[#allocation2] sm:$0xff]  ;;  %v122_v6 = vld [vmem:[#allocation3] sm:$0xff] }
  0x2e   :  { %261 = vmatmul.mubr.f32.vlgmr.msra.gmra.mrb[2].mxu0 %v44_v2  ;;  %v195_v12 = vld [vmem:[#allocation4] sm:$0xff] }
  0xfd   :  { %v115_v7 = vpop.f32.mrb[0].mxu0 }
  0xfe   :  { %v119_v8 = vadd.f32 %v115_v7, %v48_v5  ;;  %v117_v9 = vpop.f32.mrb[1].mxu0  ;;  %v189_v10 = vpop.f32.mrb[0].mxu1 }
  0xff   :  { %v193_v11 = vadd.f32 %v189_v10, %v122_v6  ;;  %v191_v13 = vpop.f32.mrb[1].mxu1 }
 0x100   :  { %121 = vst.msk [vmem:[#allocation2] sm:$0xff] %vm40_vm0, %v119_v8 }
 0x101   :  { %194 = vst.msk [vmem:[#allocation3] sm:$0xff] %vm40_vm0, %v193_v11  ;;  %v262_v15 = vpop.f32.mrb[2].mxu0 }
 0x102   :  { %v266_v16 = vadd.f32 %v262_v15, %v195_v12  ;;  %v264_v17 = vpop.f32.mrb[3].mxu0 }
 0x104   :  { %267 = vst.msk [vmem:[#allocation4] sm:$0xff] %vm40_vm0, %v266_v16 }
 0x107   :  { %v271_v22 = vld [vmem:[#allocation2] sm:$0xff] }
 0x108   :  { %v272_v20 = vld [vmem:[#allocation3] sm:$0xff]  ;;  %v279_v28 = vsel %vm278_vm1, -inf, %v271_v22 }
 0x109   :  { %v280_v21 = vsel %vm278_vm1, -inf, %v272_v20  ;;  %v284_v32 = vsel %vm40_vm0, %v279_v28, -inf }
 0x10a   :  { %v304_v23 = vsel %vm40_vm0, %v280_v21, -inf }
 0x10b   :  { %v273_v24 = vld [vmem:[#allocation4] sm:$0xff]  ;;  %v305_v25 = vrot.slane %v304_v23, 4 }
 0x10c   :  { %v281_v26 = vsel %vm40_vm0, %v273_v24, -inf  ;;  %v342_v35 = vsel %vm278_vm1, %v273_v24, 0.0 }
 0x10d   :  { %282 = vmax.xlane.f32.xlu0 %v281_v26  ;;  %v311_v27 = vrot.slane %v281_v26, 4  ;;  %v306_v29 = vmax.f32 %v304_v23, %v305_v25  ;;  %v343_v38 = vsel %vm40_vm0, %v342_v35, 0.0 }
 0x10f   :  { %v312_v30 = vmax.f32 %v281_v26, %v311_v27  ;;  %v307_v31 = vrot.slane %v306_v29, 2 }
 0x111   :  { %v313_v33 = vrot.slane %v312_v30, 2  ;;  %v308_v34 = vmax.f32 %v306_v29, %v307_v31  ;;  %285 = vmax.xlane.f32.xlu0 %v284_v32 }
 0x113   :  { %v314_v36 = vmax.f32 %v312_v30, %v313_v33  ;;  %v309_v37 = vrot.slane %v308_v34, 1 }
 0x115   :  { %v315_v39 = vrot.slane %v314_v36, 1  ;;  %v310_v40 = vmax.f32 %v308_v34, %v309_v37  ;;  %344 = vadd.xlane.f32.xlu0 %v343_v38 }
 0x117   :  { %v316_v41 = vmax.f32 %v314_v36, %v315_v39 }
 0x119   :  { %v317_v42 = vmax.f32 %v310_v40, %v316_v41 }
 0x11b   :  { %v318_v43 = vsub.f32 %v280_v21, %v317_v42  ;;  %v328_v44 = vsub.f32 %v273_v24, %v317_v42 }
 0x11d   :  { %v319_v45 = vmul.f32 1.442695, %v318_v43  ;;  %v329_v46 = vmul.f32 1.442695, %v328_v44 }
 0x11f   :  { %408 = vpow2.f32 %v319_v45 }
 0x120   :  { %410 = vpow2.f32 %v329_v46 }
 0x129   :  { %v409_v47 = vpop.eup %408 }
 0x12a   :  { %v411_v48 = vpop.eup %410  ;;  %v321_v49 = vsel %vm40_vm0, %v409_v47, 0.0 }
 0x12b   :  { %v322_v50 = vrot.slane %v321_v49, 4  ;;  %v331_v51 = vsel %vm40_vm0, %v411_v48, 0.0 }
 0x12c   :  { %v332_v52 = vrot.slane %v331_v51, 4 }
 0x12d   :  { %v323_v53 = vadd.f32 %v322_v50, %v321_v49 }
 0x12e   :  { %v333_v54 = vadd.f32 %v332_v52, %v331_v51 }
 0x12f   :  { %v324_v55 = vrot.slane %v323_v53, 2 }
 0x130   :  { %v334_v56 = vrot.slane %v333_v54, 2 }
 0x131   :  { %v325_v57 = vadd.f32 %v324_v55, %v323_v53 }
 0x132   :  { %v335_v58 = vadd.f32 %v334_v56, %v333_v54 }
 0x133   :  { %v326_v59 = vrot.slane %v325_v57, 1 }
 0x134   :  { %v336_v60 = vrot.slane %v335_v58, 1 }
 0x135   :  { %v327_v61 = vadd.f32 %v326_v59, %v325_v57 }
 0x136   :  { %v337_v62 = vadd.f32 %v336_v60, %v335_v58 }
 0x138   :  { %v338_v63 = vadd.f32 %v337_v62, %v327_v61 }
 0x13a   :  { %412 = vlog2.f32 %v338_v63 }
 0x144   :  { %v413_v0 = vpop.eup %412 }
 0x145   :  { %v340_v1 = vmul.f32 0.6931472, %v413_v0 }
 0x147   :  { %v341_v2 = vadd.f32 %v340_v1, %v317_v42 }
 0x149   :  { %v365_v3 = vsel %vm364_vm2, %v341_v2, 0.0 }
 0x14a   :  { %366 = vadd.xlane.f32.xlu0 %v365_v3 }
 0x19a   :  { %v283_v4 = vpop.xlane.xlu0 %282 }
 0x19e   :  { %v286_v5 = vpop.xlane.xlu0 %285 }
 0x19f   :  { %v287_v6 = vmax.f32 %v283_v4, %v286_v5 }
 0x1a1   :  { %v288_v7 = vsub.f32 %v273_v24, %v287_v6  ;;  %v294_v8 = vsub.f32 %v279_v28, %v287_v6 }
 0x1a2   :  { %v345_v9 = vpop.xlane.xlu0 %344 }
 0x1a3   :  { %v289_v10 = vmul.f32 1.442695, %v288_v7  ;;  %v295_v11 = vmul.f32 1.442695, %v294_v8  ;;  %v346_v12 = vrot.slane %v345_v9, 4 }
 0x1a5   :  { %414 = vpow2.f32 %v289_v10  ;;  %v347_v13 = vadd.f32 %v346_v12, %v345_v9 }
 0x1a6   :  { %416 = vpow2.f32 %v295_v11 }
 0x1a7   :  { %v348_v14 = vrot.slane %v347_v13, 2 }
 0x1a9   :  { %v349_v15 = vadd.f32 %v348_v14, %v347_v13 }
 0x1ab   :  { %v350_v16 = vrot.slane %v349_v15, 1 }
 0x1ad   :  { %v351_v17 = vadd.f32 %v350_v16, %v349_v15 }
 0x1af   :  { %v415_v18 = vpop.eup %414  ;;  %398 = vpush %v351_v17 }
 0x1b0   :  { %v291_v19 = vsel %vm40_vm0, %v415_v18, 0.0  ;;  %v417_v20 = vpop.eup %416 }
 0x1b1   :  { %292 = vadd.xlane.f32.xlu1 %v291_v19  ;;  %v297_v21 = vsel %vm40_vm0, %v417_v20, 0.0 }
 0x1b5   :  { %298 = vadd.xlane.f32.xlu1 %v297_v21 }
 0x1d7   :  { %v367_v29 = vpop.xlane.xlu0 %366 }
 0x1d8   :  { %v368_v30 = vrot.slane %v367_v29, 4 }
 0x1da   :  { %v369_v31 = vadd.f32 %v368_v30, %v367_v29 }
 0x1dc   :  { %v370_v32 = vrot.slane %v369_v31, 2 }
 0x1de   :  { %v371_v36 = vadd.f32 %v370_v32, %v369_v31 }
 0x1e0   :  { %v372_v39 = vrot.slane %v371_v36, 1  ;;  %s399_s1 = spop %398 }
 0x1e1   :  { %s376_s6 = smul.f32 2.0, %s399_s1 }
 0x1e2   :  { %v373_v42 = vadd.f32 %v372_v39, %v371_v36 }
 0x23e   :  { %v293_v22 = vpop.xlane.xlu1 %292 }
 0x242   :  { %v299_v23 = vpop.xlane.xlu1 %298 }
 0x243   :  { %v300_v24 = vadd.f32 %v299_v23, %v293_v22 }
 0x245   :  { %418 = vlog2.f32 %v300_v24 }
 0x24f   :  { %v419_v25 = vpop.eup %418 }
 0x250   :  { %v302_v26 = vmul.f32 0.6931472, %v419_v25 }
 0x252   :  { %v303_v27 = vadd.f32 %v302_v26, %v287_v6 }
 0x254   :  { %v354_v28 = vsel %vm353_vm3, %v303_v27, 0.0 }
 0x255   :  { %355 = vadd.xlane.f32.xlu1 %v354_v28 }
 0x2e2   :  { %v356_v33 = vpop.xlane.xlu1 %355 }
 0x2e3   :  { %v357_v34 = vrot.slane %v356_v33, 4 }
 0x2e5   :  { %v358_v35 = vadd.f32 %v357_v34, %v356_v33 }
 0x2e7   :  { %v359_v37 = vrot.slane %v358_v35, 2 }
 0x2e9   :  { %v360_v38 = vadd.f32 %v359_v37, %v358_v35 }
 0x2eb   :  { %v361_v40 = vrot.slane %v360_v38, 1 }
 0x2ed   :  { %v362_v41 = vadd.f32 %v361_v40, %v360_v38 }
 0x2ef   :  { %400 = vpush %v362_v41 }
 0x2f0   :  { %402 = vpush %v373_v42 }
 0x320   :  { %s401_s4 = spop %400 }
 0x321   :  { %s403_s5 = spop %402 }
 0x322   :  { %s375_s7 = sadd.f32 %s403_s5, %s401_s4 }
 0x324   :  { %s377_s8 = ssub.f32 %s375_s7, %s376_s6 }
 0x326   :  { %s380_s9 = smul.f32 0.0625, %s377_s8 }
 0x328   :  { %382 = sst [smem:[#allocation10]] %s380_s9 }
 0x329   :  { %473 = shalt.err (!%p470_p4)
}
 0x32a   :  { %s483_s17 = smov [#allocation10]  }
 0x32b   :  { %390 = dma.smem_to_hbm %s483_s17, 16, %s554_s2, [#allocation7]  }
 0x32c   :  { %478 = dma.done.wait [#allocation7], 16  }
 0x32d   :  { %479 = vsyncadd [#allocation7], 4294967280 }
 0x32e   :  { %394 = sfence }
 0x32f   :  { %395 = vsyncpa [#allocation6], 1 }
 0x330   :  { %396 = vsyncpa [#allocation9], 1 }
 0x331   :  { %397 = vsyncpa [#allocation7], 1 }

</bundles_post_ra>
